<compile_context>
chip_gen: v7x
topology: tpu7x:2x2x1
jax: 0.10.0
libtpu: 0.0.40
codegen_flags: <defaults>
</compile_context>

<pallas_src>
import math
import functools
import jax
import jax.numpy as jnp
from jax.experimental import pallas as pl
from jax.experimental.pallas import tpu as pltpu


def _round_up(x, m):
    return ((x + m - 1) // m) * m


def rnn_fc_kernel(x_ref, w_ih_t_ref, b_rnn_ref, w_fc_t_ref, b_fc_ref, out_ref):
    # Matmuls accumulate in f32 regardless of operand dtype, so tanh / relu
    # always see f32 (no bf16 VPU/EUP dependence on v5e).
    h = jnp.tanh(
        jnp.dot(x_ref[...], w_ih_t_ref[...], preferred_element_type=jnp.float32)
        + b_rnn_ref[...]                                   # (1, H) broadcast, f32
    )
    h = jnp.maximum(h, 0.0).astype(w_fc_t_ref.dtype)       # match weight dtype for MXU
    y = (
        jnp.dot(h, w_fc_t_ref[...], preferred_element_type=jnp.float32)
        + b_fc_ref[...]                                    # (1, O_pad) broadcast, f32
    )
    out_ref[...] = y.astype(out_ref.dtype)


def prepare_params(w_ih, b_ih, b_hh, w_fc, b_fc,
                   *, compute_dtype=jnp.float32, lane_pad=128):
    """One-time parameter prep (hoisted out of the per-call path).

    w_ih: (H, I), b_ih/b_hh: (H,), w_fc: (O, H), b_fc: (O,).
    Returns transposed / padded weights ready for the kernel.
    """
    H, _ = w_ih.shape
    O = w_fc.shape[0]
    O_pad = _round_up(O, lane_pad)                         # lane-dense output

    w_ih_t = jnp.transpose(w_ih).astype(compute_dtype)     # (I, H)
    w_fc_t = jnp.zeros((H, O_pad), compute_dtype).at[:, :O].set(
        jnp.transpose(w_fc).astype(compute_dtype))         # (H, O_pad)
    b_rnn = (b_ih + b_hh).astype(jnp.float32).reshape(1, H)
    b_fc_p = jnp.zeros((1, O_pad), jnp.float32).at[:, :O].set(
        b_fc.astype(jnp.float32))                          # (1, O_pad)
    return w_ih_t, b_rnn, w_fc_t, b_fc_p, O


@functools.partial(jax.jit, static_argnames=("out_size", "block_b"))
def rnn_forward(x, w_ih_t, b_rnn, w_fc_t, b_fc_p, *, out_size, block_b=512):
    """x: (B, I).  Returns (B, out_size) f32."""
    B, I = x.shape
    H = w_ih_t.shape[1]
    O_pad = w_fc_t.shape[1]

    # Batch tile: multiple of 8 (sublane), capped so everything comfortably
    # fits the smallest (v7x) VMEM budget with double buffering.
    TB = min(block_b, _round_up(B, 8))
    B_pad = _round_up(B, TB)

    xc = x.astype(w_ih_t.dtype)
    if B_pad != B:
        xc = jnp.pad(xc, ((0, B_pad - B), (0, 0)))

    grid = (B_pad // TB,)
    wbytes = jnp.dtype(w_ih_t.dtype).itemsize
    flops = 2 * B_pad * (I * H + H * O_pad)
    bytes_accessed = (B_pad * I * wbytes
                      + (I * H + H * O_pad) * wbytes
                      + (H + O_pad) * 4
                      + B_pad * O_pad * 4)

    out = pl.pallas_call(
        rnn_fc_kernel,
        out_shape=jax.ShapeDtypeStruct((B_pad, O_pad), jnp.float32),
        grid=grid,
        in_specs=[
            pl.BlockSpec((TB, I), lambda i: (i, 0)),       # streamed over batch
            pl.BlockSpec((I, H), lambda i: (0, 0)),        # weights stay resident
            pl.BlockSpec((1, H), lambda i: (0, 0)),
            pl.BlockSpec((H, O_pad), lambda i: (0, 0)),
            pl.BlockSpec((1, O_pad), lambda i: (0, 0)),
        ],
        out_specs=pl.BlockSpec((TB, O_pad), lambda i: (i, 0)),
        compiler_params=pltpu.CompilerParams(
            dimension_semantics=("parallel",),             # v7x: shard batch over 2 TCs
            vmem_limit_bytes=64 * 1024 * 1024,
        ),
        cost_estimate=pl.CostEstimate(
            flops=flops,
            transcendentals=B_pad * H,                     # tanh
            bytes_accessed=bytes_accessed,
        ),
    )(xc, w_ih_t, b_rnn, w_fc_t, b_fc_p)

    return out[:B, :out_size]


def init_params(key, input_size, hidden_size, output_size):
    """Deterministic init mirroring PyTorch's uniform(-1/sqrt(fan), 1/sqrt(fan))."""
    k1, k2, k3, k4, k5 = jax.random.split(key, 5)
    s = 1.0 / math.sqrt(hidden_size)
    w_ih = jax.random.uniform(k1, (hidden_size, input_size), jnp.float32, -s, s)
    b_ih = jax.random.uniform(k2, (hidden_size,), jnp.float32, -s, s)
    # W_hh exists in the module but multiplies h0 == 0; only its bias matters.
    b_hh = jax.random.uniform(k3, (hidden_size,), jnp.float32, -s, s)
    w_fc = jax.random.uniform(k4, (output_size, hidden_size), jnp.float32, -s, s)
    b_fc = jax.random.uniform(k5, (output_size,), jnp.float32, -s, s)
    return w_ih, b_ih, b_hh, w_fc, b_fc


def _reference(x, w_ih, b_ih, b_hh, w_fc, b_fc):
    h = jnp.tanh(x @ w_ih.T + b_ih + b_hh)
    return jnp.maximum(h, 0.0) @ w_fc.T + b_fc


if __name__ == "__main__":
    B, I, H, O = 8, 16, 32, 8
    key = jax.random.PRNGKey(0)
    kx, kp, kx2 = jax.random.split(key, 3)
    x = jax.random.normal(kx, (B, I), jnp.float32)
    w_ih, b_ih, b_hh, w_fc, b_fc = init_params(kp, I, H, O)

    # --- f32 path (tight tolerance) ---
    p32 = prepare_params(w_ih, b_ih, b_hh, w_fc, b_fc, compute_dtype=jnp.float32)
    w_ih_t, b_rnn, w_fc_t, b_fc_p, out_size = p32
    out = rnn_forward(x, w_ih_t, b_rnn, w_fc_t, b_fc_p, out_size=out_size)
    out = jax.block_until_ready(out)
    y_ref = _reference(x, w_ih, b_ih, b_hh, w_fc, b_fc)
    assert out.shape == (B, O)
    assert jnp.allclose(out, y_ref, atol=1e-5, rtol=1e-5)

    # --- multi-tile grid exercise (B not a single block; forces grid > 1) ---
    B2 = 24
    x2 = jax.random.normal(kx2, (B2, I), jnp.float32)
    out2 = rnn_forward(x2, w_ih_t, b_rnn, w_fc_t, b_fc_p,
                       out_size=out_size, block_b=8)
    out2 = jax.block_until_ready(out2)
    y2_ref = _reference(x2, w_ih, b_ih, b_hh, w_fc, b_fc)
    assert out2.shape == (B2, O)
    assert jnp.allclose(out2, y2_ref, atol=1e-5, rtol=1e-5)

    # --- bf16 operands, f32 accumulation (v6e/v7x MXU path; halves DMA bytes) ---
    pbf = prepare_params(w_ih, b_ih, b_hh, w_fc, b_fc, compute_dtype=jnp.bfloat16)
    w_ih_tb, b_rnnb, w_fc_tb, b_fc_pb, out_size_b = pbf
    outb = rnn_forward(x, w_ih_tb, b_rnnb, w_fc_tb, b_fc_pb, out_size=out_size_b)
    outb = jax.block_until_ready(outb)
    assert outb.shape == (B, O)
    assert jnp.allclose(outb, y_ref, atol=3e-2, rtol=3e-2)

    print("KERNEL_OK")
</pallas_src>

<mosaic_0001>
module attributes {stable_mosaic.version = 11 : i64} {
  func.func @rnn_fc_kernel(%arg0: i32, %arg1: memref<8x16xf32, #tpu.memory_space<vmem>>, %arg2: memref<16x32xf32, #tpu.memory_space<vmem>>, %arg3: memref<1x32xf32, #tpu.memory_space<vmem>>, %arg4: memref<32x128xf32, #tpu.memory_space<vmem>>, %arg5: memref<1x128xf32, #tpu.memory_space<vmem>>, %arg6: memref<8x128xf32, #tpu.memory_space<vmem>>) attributes {dimension_semantics = [#tpu.dimension_semantics<parallel>], iteration_bounds = array<i64: 1>, scalar_prefetch = 0 : i64, scratch_operands = 0 : i64, tpu.core_type = #tpu.core_type<tc>, window_params = [{transform_indices = @transform_0, window_bounds = array<i64: 8, 16>}, {pipeline_mode = #tpu.pipeline_mode<synchronous>, transform_indices = @transform_1, window_bounds = array<i64: 16, 32>}, {pipeline_mode = #tpu.pipeline_mode<synchronous>, transform_indices = @transform_2, window_bounds = array<i64: 1, 32>}, {pipeline_mode = #tpu.pipeline_mode<synchronous>, transform_indices = @transform_3, window_bounds = array<i64: 32, 128>}, {pipeline_mode = #tpu.pipeline_mode<synchronous>, transform_indices = @transform_4, window_bounds = array<i64: 1, 128>}, {transform_indices = @transform_5, window_bounds = array<i64: 8, 128>}]} {
    %c0 = arith.constant 0 : index
    %c0_0 = arith.constant 0 : index
    %0 = vector.load %arg1[%c0, %c0_0] : memref<8x16xf32, #tpu.memory_space<vmem>>, vector<8x16xf32>
    %c0_1 = arith.constant 0 : index
    %c0_2 = arith.constant 0 : index
    %1 = vector.load %arg2[%c0_1, %c0_2] : memref<16x32xf32, #tpu.memory_space<vmem>>, vector<16x32xf32>
    %cst = arith.constant dense<0.000000e+00> : vector<8x32xf32>
    %2 = tpu.matmul %0, %1, %cst {dimension_numbers = #tpu.dot_dimension_numbers<[1], [0], [0], [1], [0, 0, 1, 1], [], []>} : vector<8x16xf32>, vector<16x32xf32>, vector<8x32xf32> -> vector<8x32xf32>
    %c0_3 = arith.constant 0 : index
    %c0_4 = arith.constant 0 : index
    %3 = vector.load %arg3[%c0_3, %c0_4] : memref<1x32xf32, #tpu.memory_space<vmem>>, vector<1x32xf32>
    %4 = vector.broadcast %3 : vector<1x32xf32> to vector<8x32xf32>
    %5 = arith.addf %2, %4 : vector<8x32xf32>
    %6 = math.tanh %5 : vector<8x32xf32>
    %cst_5 = arith.constant 0.000000e+00 : f32
    %7 = vector.broadcast %cst_5 : f32 to vector<8x32xf32>
    %8 = arith.maximumf %6, %7 : vector<8x32xf32>
    %c0_6 = arith.constant 0 : index
    %c0_7 = arith.constant 0 : index
    %9 = vector.load %arg4[%c0_6, %c0_7] : memref<32x128xf32, #tpu.memory_space<vmem>>, vector<32x128xf32>
    %cst_8 = arith.constant dense<0.000000e+00> : vector<8x128xf32>
    %10 = tpu.matmul %8, %9, %cst_8 {dimension_numbers = #tpu.dot_dimension_numbers<[1], [0], [0], [1], [0, 0, 1, 1], [], []>} : vector<8x32xf32>, vector<32x128xf32>, vector<8x128xf32> -> vector<8x128xf32>
    %c0_9 = arith.constant 0 : index
    %c0_10 = arith.constant 0 : index
    %11 = vector.load %arg5[%c0_9, %c0_10] : memref<1x128xf32, #tpu.memory_space<vmem>>, vector<1x128xf32>
    %12 = vector.broadcast %11 : vector<1x128xf32> to vector<8x128xf32>
    %13 = arith.addf %10, %12 : vector<8x128xf32>
    %c0_11 = arith.constant 0 : index
    %c0_12 = arith.constant 0 : index
    %14 = vector.load %arg6[%c0_11, %c0_12] : memref<8x128xf32, #tpu.memory_space<vmem>>, vector<8x128xf32>
    tpu.vector_store %arg6[%c0_11, %c0_12], %13 {strides = array<i32>} : memref<8x128xf32, #tpu.memory_space<vmem>>, vector<8x128xf32>,
    return
  }
  func.func @transform_0(%arg0: i32) -> (i32, i32) {
    %c0_i32 = arith.constant 0 : i32
    %c0_i32_0 = arith.constant 0 : i32
    return %arg0, %c0_i32 : i32, i32
  }
  func.func @transform_1(%arg0: i32) -> (i32, i32) {
    %c0_i32 = arith.constant 0 : i32
    %c0_i32_0 = arith.constant 0 : i32
    %c0_i32_1 = arith.constant 0 : i32
    return %c0_i32, %c0_i32_0 : i32, i32
  }
  func.func @transform_2(%arg0: i32) -> (i32, i32) {
    %c0_i32 = arith.constant 0 : i32
    %c0_i32_0 = arith.constant 0 : i32
    %c0_i32_1 = arith.constant 0 : i32
    return %c0_i32, %c0_i32_0 : i32, i32
  }
  func.func @transform_3(%arg0: i32) -> (i32, i32) {
    %c0_i32 = arith.constant 0 : i32
    %c0_i32_0 = arith.constant 0 : i32
    %c0_i32_1 = arith.constant 0 : i32
    return %c0_i32, %c0_i32_0 : i32, i32
  }
  func.func @transform_4(%arg0: i32) -> (i32, i32) {
    %c0_i32 = arith.constant 0 : i32
    %c0_i32_0 = arith.constant 0 : i32
    %c0_i32_1 = arith.constant 0 : i32
    return %c0_i32, %c0_i32_0 : i32, i32
  }
  func.func @transform_5(%arg0: i32) -> (i32, i32) {
    %c0_i32 = arith.constant 0 : i32
    %c0_i32_0 = arith.constant 0 : i32
    return %arg0, %c0_i32 : i32, i32
  }
}

</mosaic_0001>

<bundles_post_ra>
// kernel: rnn_forward.1
= control target key start
LH: loop header
LB: loop body
LE: loop exit
PB: predicated region body
PF: predicated region fallthrough
CT: control target
= control target key end

     0   :  { %10 = vsyncpa [#allocation3], 0  ;;  %s577_s0 = inlined_call_operand.hbm [shape: f32[8,16], index: 0, kind: input, shape index: {}]   ;;  %s578_s1 = inlined_call_operand.hbm [shape: f32[16,32], index: 1, kind: input, shape index: {}]   ;;  %s579_s2 = inlined_call_operand.hbm [shape: f32[1,32], index: 2, kind: input, shape index: {}]   ;;  %s580_s3 = inlined_call_operand.hbm [shape: f32[32,128], index: 3, kind: input, shape index: {}]   ;;  %s581_s4 = inlined_call_operand.hbm [shape: f32[1,128], index: 4, kind: input, shape index: {}]   ;;  %s582_s5 = inlined_call_operand.hbm [shape: f32[8,128], index: 5, kind: output, shape index: {}]  }
   0x1   :  { %11 = vsyncpa [#allocation6], 0 }
   0x2   :  { %12 = vsyncpa [#allocation9], 0 }
   0x3   :  { %13 = vsyncpa [#allocation4], 0  ;;  %s464_s18 = smov [#allocation5]   ;;  %s324_s22 = scalar_lea.hbm %s578_s1, 256 }
   0x4   :  { %s29_s19 = sshll.u32 %s464_s18, 4  ;;  %p325_p0 = scmp.ne.s32.totalorder %s578_s1, %s324_s22  ;;  %s30_s19 = int_to_ptr.vmem [resolvable:$true] %s29_s19 }
   0x5   :  { %p328_p1 = scmp.lt.u32.totalorder %s324_s22, %s578_s1 }
   0x7   :  { %p330_p2 = pnand %p328_p1, %p325_p0 }
   0x9   :  { %333 = shalt.err (!%p330_p2)
}
   0xa   :  { %s334_s27 = scalar_lea.vmem %s30_s19, 256  ;;  %p339_p4 = scmp.lt.s32.totalorder %s30_s19, %s30_s19 }
   0xb   :  { %p335_p3 = scmp.ne.s32.totalorder %s30_s19, %s334_s27  ;;  %p340_p5 = scmp.lt.s32.totalorder %s334_s27, %s334_s27 }
   0xd   :  { %p341_p6 = por %p340_p5, %p339_p4 }
   0xf   :  { %p342_p7 = pnand %p341_p6, %p335_p3 }
  0x11   :  { %345 = shalt.err (!%p342_p7)
}
  0x12   :  { %s465_s28 = smov 128   ;;  %s466_s29 = smov 8  }
  0x13   :  { %35 = dma.hbm_to_vmem [thread:$0]  %s578_s1, 256, %s30_s19, [#allocation6], %s465_s28, %s465_s28, %s466_s29  }
  0x14   :  { %s467_s7 = smov [#allocation8]   ;;  %s468_s9 = smov [#allocation2]  }
  0x15   :  { %s51_s8 = sshll.u32 %s467_s7, 4  ;;  %s20_s10 = sshll.u32 %s468_s9, 4  ;;  %s52_s8 = int_to_ptr.vmem [resolvable:$true] %s51_s8  ;;  %s21_s10 = int_to_ptr.vmem [resolvable:$true] %s20_s10 }
  0x16   :  { %s346_s13 = scalar_lea.hbm %s580_s3, 512 }
  0x17   :  { %p347_p8 = scmp.ne.s32.totalorder %s580_s3, %s346_s13  ;;  %p350_p9 = scmp.lt.u32.totalorder %s346_s13, %s580_s3 }
  0x19   :  { %p352_p10 = pnand %p350_p9, %p347_p8 }
  0x1b   :  { %355 = shalt.err (!%p352_p10)
}
  0x1c   :  { %s356_s1 = scalar_lea.vmem %s52_s8, 512  ;;  %p361_p12 = scmp.lt.s32.totalorder %s52_s8, %s52_s8 }
  0x1d   :  { %p357_p11 = scmp.ne.s32.totalorder %s52_s8, %s356_s1  ;;  %p362_p13 = scmp.lt.s32.totalorder %s356_s1, %s356_s1 }
  0x1f   :  { %p363_p0 = por %p362_p13, %p361_p12 }
  0x21   :  { %p364_p1 = pnand %p363_p0, %p357_p11 }
  0x23   :  { %367 = shalt.err (!%p364_p1)
}
  0x24   :  { %57 = dma.hbm_to_vmem [thread:$0]  %s580_s3, 512, %s52_s8, [#allocation9], %s465_s28, %s465_s28, %s466_s29  }
  0x25   :  { %s368_s22 = scalar_lea.hbm %s577_s0, 128 }
  0x26   :  { %p369_p2 = scmp.ne.s32.totalorder %s577_s0, %s368_s22  ;;  %p372_p3 = scmp.lt.u32.totalorder %s368_s22, %s577_s0 }
  0x28   :  { %p374_p4 = pnand %p372_p3, %p369_p2 }
  0x2a   :  { %377 = shalt.err (!%p374_p4)
}
  0x2b   :  { %s378_s27 = scalar_lea.vmem %s21_s10, 128  ;;  %p383_p6 = scmp.lt.s32.totalorder %s21_s10, %s21_s10 }
  0x2c   :  { %p379_p5 = scmp.ne.s32.totalorder %s21_s10, %s378_s27  ;;  %p384_p7 = scmp.lt.s32.totalorder %s378_s27, %s378_s27 }
  0x2e   :  { %p385_p8 = por %p384_p7, %p383_p6 }
  0x30   :  { %p386_p9 = pnand %p385_p8, %p379_p5 }
  0x32   :  { %389 = shalt.err (!%p386_p9)
}
  0x33   :  { %23 = dma.hbm_to_vmem [thread:$0]  %s577_s0, 128, %s21_s10, [#allocation3]  }
  0x34   :  { %s469_s29 = smov [#allocation7]   ;;  %s470_s6 = smov [#allocation10]  }
  0x35   :  { %s42_s30 = sshll.u32 %s469_s29, 4  ;;  %s64_s7 = sshll.u32 %s470_s6, 4  ;;  %s43_s30 = int_to_ptr.vmem [resolvable:$true] %s42_s30  ;;  %s65_s7 = int_to_ptr.vmem [resolvable:$true] %s64_s7 }
  0x36   :  { %s390_s11 = scalar_lea.hbm %s579_s2, 16 }
  0x37   :  { %p391_p10 = scmp.ne.s32.totalorder %s579_s2, %s390_s11  ;;  %p394_p11 = scmp.lt.u32.totalorder %s390_s11, %s579_s2 }
  0x39   :  { %p396_p12 = pnand %p394_p11, %p391_p10 }
  0x3b   :  { %399 = shalt.err (!%p396_p12)
}
  0x3c   :  { %s400_s0 = scalar_lea.vmem %s43_s30, 16  ;;  %s404_s10 = scalar_lea.vmem %s43_s30, 32 }
  0x3d   :  { %p401_p13 = scmp.ne.s32.totalorder %s43_s30, %s400_s0  ;;  %p405_p0 = scmp.lt.s32.totalorder %s43_s30, %s43_s30 }
  0x3e   :  { %p406_p1 = scmp.lt.s32.totalorder %s404_s10, %s400_s0 }
  0x40   :  { %p407_p2 = por %p406_p1, %p405_p0 }
  0x42   :  { %p408_p3 = pnand %p407_p2, %p401_p13 }
  0x44   :  { %411 = shalt.err (!%p408_p3)
}
  0x45   :  { %45 = dma.hbm_to_vmem [thread:$0]  %s579_s2, 16, %s43_s30, [#allocation6]  }
  0x46   :  { %s412_s19 = scalar_lea.hbm %s581_s4, 16 }
  0x47   :  { %p413_p4 = scmp.ne.s32.totalorder %s581_s4, %s412_s19  ;;  %p416_p5 = scmp.lt.u32.totalorder %s412_s19, %s581_s4 }
  0x49   :  { %p418_p6 = pnand %p416_p5, %p413_p4 }
  0x4b   :  { %421 = shalt.err (!%p418_p6)
}
  0x4c   :  { %s422_s24 = scalar_lea.vmem %s65_s7, 16  ;;  %s426_s25 = scalar_lea.vmem %s65_s7, 32 }
  0x4d   :  { %p423_p7 = scmp.ne.s32.totalorder %s65_s7, %s422_s24  ;;  %p427_p8 = scmp.lt.s32.totalorder %s65_s7, %s65_s7 }
  0x4e   :  { %p428_p9 = scmp.lt.s32.totalorder %s426_s25, %s422_s24 }
  0x50   :  { %p429_p10 = por %p428_p9, %p427_p8 }
  0x52   :  { %p430_p11 = pnand %p429_p10, %p423_p7 }
  0x54   :  { %433 = shalt.err (!%p430_p11)
}
  0x55   :  { %67 = dma.hbm_to_vmem [thread:$0]  %s581_s4, 16, %s65_s7, [#allocation9]  }
  0x56   :  { %456 = dma.done.wait [#allocation3], 128  }
  0x57   :  { %457 = vsyncadd [#allocation3], 4294967168 }
  0x58   :  { %458 = dma.done.wait [#allocation6], 272  }
  0x59   :  { %459 = vsyncadd [#allocation6], 4294967024 }
  0x5a   :  { %460 = dma.done.wait [#allocation9], 528  }
  0x5b   :  { %461 = vsyncadd [#allocation9], 4294966768  ;;  %v471_v0 = vmov 0.0|0.0   ;;  %vm472_vm0 = vmmov 0   ;;  %v473_v1 = vmov 0.0   ;;  %v84_v2 = vld [vmem:[#allocation5] sm:$0xff] }
  0x5c   :  { %302 = vmatprep.subr.bf16.mxu0 %v471_v0  ;;  %288 = vmatprep.mubr.msk.f32.mxu0 %vm472_vm0, %v473_v1  ;;  %v85_v3 = vld [vmem:[#allocation5 + $0x8] sm:$0xff]  ;;  %v83_v5 = vld [vmem:[#allocation2] sm:$0xff]  ;;  %vm93_vm1 = vcmask 130048   ;;  %v272_v12 = vld [vmem:[#allocation7] ss:$0 sm:$0xff]  ;;  %vm180_vm2 = vcmask 261120  }
  0x5d   :  { %305 = vmatprep.subr.bf16.mxu1 %v471_v0  ;;  %299 = vmatprep.mubr.msk.f32.mxu1 %vm472_vm0, %v473_v1  ;;  %v303_v4 = vpack.c.bf16 %v85_v3, %v84_v2  ;;  %v169_v6 = vld [vmem:[#allocation8] sm:$0xff]  ;;  %v170_v7 = vld [vmem:[#allocation8 + $0x8] sm:$0xff]  ;;  %v171_v9 = vld [vmem:[#allocation8 + $0x10] sm:$0xff]  ;;  %s474_s4 = smov [#allocation11]  }
  0x5e   :  { %v306_v8 = vpack.c.bf16 %v170_v7, %v169_v6  ;;  %v172_v10 = vld [vmem:[#allocation8 + $0x18] sm:$0xff]  ;;  %v274_v18 = vld [vmem:[#allocation10] ss:$0 sm:$0xff]  ;;  %s261_s27 = sshll.u32 %s474_s4, 4  ;;  %s262_s27 = int_to_ptr.vmem [resolvable:$true] %s261_s27 }
  0x5f   :  { %304 = vmatpush3.bf16.msra.mxu0 %v303_v4  ;;  %v309_v11 = vpack.c.bf16 %v172_v10, %v171_v9  ;;  %s434_s3 = scalar_lea.vmem %s262_s27, 128  ;;  %p439_p13 = scmp.lt.s32.totalorder %s262_s27, %s262_s27 }
  0x60   :  { %307 = vmatpush3.bf16.msra.mxu1 %v306_v8  ;;  %p435_p12 = scmp.ne.s32.totalorder %s262_s27, %s434_s3  ;;  %p440_p0 = scmp.lt.s32.totalorder %s434_s3, %s434_s3 }
  0x61   :  { %308 = vmatprep.subr.bf16.mxu1 %v471_v0 }
  0x62   :  { %289 = vmatmul.mubr.msk.f32.vlgmr.msra.gmra.mrb[0].mxu0 %vm93_vm1, %v83_v5  ;;  %p441_p1 = por %p440_p0, %p439_p13 }
  0x64   :  { %310 = vmatpush3.bf16.msra.mxu1 %v309_v11  ;;  %p442_p2 = pnand %p441_p1, %p435_p12 }
 0x135   :  { %v163_v13 = vpop.f32.mrb[0].mxu0 }
 0x136   :  { %v164_v14 = vadd.f32 %v272_v12, %v163_v13  ;;  %v290_v15 = vpop.f32.mrb[1].mxu0 }
 0x138   :  { %322 = vtanh.f32 %v164_v14 }
 0x142   :  { %v323_v16 = vpop.eup %322 }
 0x143   :  { %v168_v17 = vmax.f32 %v323_v16, 0.0 }
 0x145   :  { %300 = vmatmul.mubr.msk.f32.vlgmr.msra.gmra.mrb[0].mxu1 %vm180_vm2, %v168_v17 }
 0x218   :  { %v250_v19 = vpop.f32.mrb[0].mxu1 }
 0x219   :  { %v251_v20 = vadd.f32 %v274_v18, %v250_v19  ;;  %v301_v21 = vpop.f32.mrb[1].mxu1 }
 0x21b   :  { %254 = vst [vmem:[#allocation11] sm:$0xff] %v251_v20 }
 0x21c   :  { %445 = shalt.err (!%p442_p2)
}
 0x21d   :  { %s446_s30 = scalar_lea.hbm %s582_s5, 128 }
 0x21e   :  { %p447_p3 = scmp.ne.s32.totalorder %s582_s5, %s446_s30  ;;  %p450_p4 = scmp.lt.u32.totalorder %s446_s30, %s582_s5 }
 0x220   :  { %p452_p5 = pnand %p450_p4, %p447_p3 }
 0x222   :  { %455 = shalt.err (!%p452_p5)
}
 0x223   :  { %264 = dma.vmem_to_hbm [thread:$0]  %s262_s27, 128, %s582_s5, [#allocation4]  }
 0x224   :  { %462 = dma.done.wait [#allocation4], 128  }
 0x225   :  { %463 = vsyncadd [#allocation4], 4294967168 }
 0x226   :  { %268 = vsyncpa [#allocation3], 1 }
 0x227   :  { %269 = vsyncpa [#allocation6], 1 }
 0x228   :  { %270 = vsyncpa [#allocation9], 1 }
 0x229   :  { %271 = vsyncpa [#allocation4], 1 }

</bundles_post_ra>
